<compile_context>
chip_gen: v6e
topology: v6e:2x2x1
jax: 0.10.0
libtpu: 0.0.40
codegen_flags: <defaults>
</compile_context>

<pallas_src>
import functools
import math

import jax
import jax.numpy as jnp
import numpy as np
from jax.experimental import pallas as pl
from jax.experimental.pallas import tpu as pltpu


# ----------------------------------------------------------------------------
# Kernel: fused  Linear -> LeakyReLU -> (1-wide) head
# ----------------------------------------------------------------------------
def _mlp_value_kernel(x_ref, w1_ref, b1_ref, w2_ref, b2_ref, o_ref, *,
                      head_on_mxu, matmul_dtype):
    x = x_ref[...]
    if x.dtype != matmul_dtype:
        x = x.astype(matmul_dtype)            # bf16 feed for the MXU (f32 acc)
    # Hidden layer on the MXU, accumulate in f32.
    h = jnp.dot(x, w1_ref[...], preferred_element_type=jnp.float32)
    h = h + b1_ref[...]                       # [TB, 512] + [1, 512] broadcast
    # LeakyReLU (PyTorch default slope 0.01):  mul + max, 2 VPU ops/elem.
    h = jnp.maximum(h, 0.01 * h)
    if head_on_mxu:
        # Small D: MXU slot has slack -> N=1 f32 matmul, w2 as a [512, 1] column.
        out = jnp.dot(h, w2_ref[...], preferred_element_type=jnp.float32)
    else:
        # Large D: keep the head off the MXU -> VPU multiply + XLU lane reduce,
        # w2 as a [1, 512] row.
        out = jnp.sum(h * w2_ref[...], axis=-1, keepdims=True)
    out = out + b2_ref[0]                     # scalar bias from SMEM
    o_ref[...] = out.astype(o_ref.dtype)


# ----------------------------------------------------------------------------
# Wrapper
# ----------------------------------------------------------------------------
def linear_value_baseline_forward(x, w1, b1, w2, b2, *, block_b=None,
                                  matmul_dtype=jnp.bfloat16, head=None):
    """x: [B, D] f32, w1: [D, 512], b1: [512], w2: [512, 1], b2: [1] -> [B, 1]."""
    B, D = x.shape
    H = w1.shape[1]
    matmul_dtype = np.dtype(matmul_dtype)

    # ---- batch tile selection (multiple of 8 sublanes, VMEM-budget aware) ----
    if block_b is None:
        # per-row bytes: x double buffer (f32) + h / head intermediates (f32,
        # may spill to VMEM) + lane-padded output double buffer.
        per_row = 2 * D * 4 + 2 * H * 4 + 2 * 128 * 4
        block_b = max(256, min(2048, (20 << 20) // per_row))
    block_b = max(8, (int(block_b) // 8) * 8)          # sublane-aligned
    b_sub = ((B + 7) // 8) * 8
    tb = min(block_b, b_sub)

    grid_b = pl.cdiv(B, tb)
    b_pad = grid_b * tb
    # Only pad (one extra HBM pass over x) when the batch is ragged; the common
    # aligned case (B % tb == 0) runs pad-free.
    x_p = x if b_pad == B else jnp.pad(x, ((0, b_pad - B), (0, 0)))

    # ---- head placement: MXU for small D (MXU slack), VPU/XLU for large D ----
    head_on_mxu = (head == "mxu") or (head is None and D < 256)

    w1_k = w1.astype(matmul_dtype)                       # cast once, in HBM
    b1_2d = b1.reshape(1, H).astype(jnp.float32)
    w2_k = (w2.reshape(H, 1) if head_on_mxu else w2.reshape(1, H)).astype(jnp.float32)
    b2_1d = b2.reshape(1).astype(jnp.float32)

    kernel = functools.partial(_mlp_value_kernel,
                               head_on_mxu=head_on_mxu,
                               matmul_dtype=matmul_dtype)

    def _footprint(weight_bufs):
        return (2 * tb * D * 4                           # x double buffer (f32)
                + weight_bufs * D * H * matmul_dtype.itemsize   # w1
                + weight_bufs * 2 * 8 * H * 4            # b1, w2 (sublane-padded)
                + 2 * tb * 128 * 4                       # out (lane-padded) x2
                + 2 * tb * H * 4)                        # h / head spill headroom

    def _build(buffered_weights):
        wmode = {"pipeline_mode": pl.Buffered(1)} if buffered_weights else {}
        vmem_limit = int(1.3 * _footprint(1 if buffered_weights else 2)) + (4 << 20)
        vmem_limit = min(max(vmem_limit, 16 << 20), 56 << 20)   # < v7x 64 MiB phys
        return pl.pallas_call(
            kernel,
            out_shape=jax.ShapeDtypeStruct((b_pad, 1), x.dtype),
            grid=(grid_b,),
            in_specs=[
                # x: new tile every grid step (software pipelined by Pallas).
                pl.BlockSpec((tb, D), lambda i: (i, 0)),
                # Weights / biases: constant block index -> stay VMEM-resident;
                # single-buffered since they never change across steps.
                pl.BlockSpec((D, H), lambda i: (0, 0), **wmode),
                pl.BlockSpec((1, H), lambda i: (0, 0), **wmode),
                pl.BlockSpec(w2_k.shape, lambda i: (0, 0), **wmode),
                # b2: single scalar -> SMEM (no padded (8,128) VMEM tile).
                pl.BlockSpec(memory_space=pltpu.MemorySpace.SMEM),
            ],
            out_specs=pl.BlockSpec((tb, 1), lambda i: (i, 0)),
            compiler_params=pltpu.CompilerParams(
                # "parallel" lets v7x shard batch tiles over its 2 TensorCores.
                dimension_semantics=("parallel",),
                vmem_limit_bytes=vmem_limit,
            ),
        )

    args = (x_p, w1_k, b1_2d, w2_k, b2_1d)
    try:
        out = _build(True)(*args)
    except Exception:
        # Graceful fallback for toolchains that reject single-buffered
        # (Buffered(1)) constant input blocks: default double-buffered weights.
        out = _build(False)(*args)

    return out if b_pad == B else out[:B]


# ----------------------------------------------------------------------------
# Deterministic parameter init (mirrors nn.init.orthogonal_(w, sqrt(2)),
# bias.zero_()).
# ----------------------------------------------------------------------------
def _orthogonal(key, out_features, in_features, gain):
    rows, cols = out_features, in_features
    flat = jax.random.normal(key, (max(rows, cols), min(rows, cols)), jnp.float32)
    q, r = jnp.linalg.qr(flat)
    q = q * jnp.sign(jnp.diag(r))[None, :]
    if rows < cols:
        q = q.T
    return gain * q[:rows, :cols]


def make_params(key, input_dims, hidden=512):
    k1, k2 = jax.random.split(key)
    gain = math.sqrt(2.0)
    w1_torch = _orthogonal(k1, hidden, input_dims, gain)   # [512, D] (torch layout)
    w2_torch = _orthogonal(k2, 1, hidden, gain)            # [1, 512]
    b1 = jnp.zeros((hidden,), jnp.float32)
    b2 = jnp.zeros((1,), jnp.float32)
    # Pre-transpose to kernel layout: [D, 512] and [512, 1].
    return w1_torch.T, b1, w2_torch.T, b2


def reference_forward(x, w1, b1, w2, b2, matmul_dtype=jnp.float32):
    h = jnp.dot(x.astype(matmul_dtype), w1.astype(matmul_dtype),
                preferred_element_type=jnp.float32) + b1[None, :]
    h = jnp.maximum(h, 0.01 * h)
    return jnp.dot(h, w2, preferred_element_type=jnp.float32) + b2[None, :]


if __name__ == "__main__":
    key = jax.random.PRNGKey(0)
    kx, kp, kp2 = jax.random.split(key, 3)

    # --- Test 1: small batch, small D (MXU head, bf16 matmul default path) ---
    B, D = 8, 32
    x = jax.random.normal(kx, (B, D), jnp.float32)
    w1, b1, w2, b2 = make_params(kp, D)

    out = jax.block_until_ready(linear_value_baseline_forward(x, w1, b1, w2, b2))
    assert out.shape == (B, 1)
    ref_bf16 = reference_forward(x, w1, b1, w2, b2, matmul_dtype=jnp.bfloat16)
    np.testing.assert_allclose(np.asarray(out), np.asarray(ref_bf16),
                               rtol=2e-3, atol=2e-3)
    ref_f32 = reference_forward(x, w1, b1, w2, b2)
    np.testing.assert_allclose(np.asarray(out), np.asarray(ref_f32),
                               rtol=5e-2, atol=1e-1)   # bf16-matmul sanity check

    # --- Test 2: ragged batch + multi-step grid + VPU head + pure f32 path ---
    B2, D2 = 20, 512
    x2 = jax.random.normal(jax.random.PRNGKey(1), (B2, D2), jnp.float32)
    w1b, b1b, w2b, b2b = make_params(kp2, D2)
    out2 = jax.block_until_ready(
        linear_value_baseline_forward(x2, w1b, b1b, w2b, b2b,
                                      block_b=8, matmul_dtype=jnp.float32))
    assert out2.shape == (B2, 1)
    ref2 = reference_forward(x2, w1b, b1b, w2b, b2b)
    np.testing.assert_allclose(np.asarray(out2), np.asarray(ref2),
                               rtol=1e-5, atol=1e-4)

    print("KERNEL_OK")
</pallas_src>

<mosaic_0001>
module attributes {stable_mosaic.version = 11 : i64} {
  func.func @_mlp_value_kernel(%arg0: i32, %arg1: memref<8x32xf32, #tpu.memory_space<vmem>>, %arg2: memref<32x512xbf16, #tpu.memory_space<vmem>>, %arg3: memref<1x512xf32, #tpu.memory_space<vmem>>, %arg4: memref<512x1xf32, #tpu.memory_space<vmem>>, %arg5: memref<1xf32, #tpu.memory_space<smem>>, %arg6: memref<8x1xf32, #tpu.memory_space<vmem>>) attributes {dimension_semantics = [#tpu.dimension_semantics<parallel>], iteration_bounds = array<i64: 1>, scalar_prefetch = 0 : i64, scratch_operands = 0 : i64, tpu.core_type = #tpu.core_type<tc>, window_params = [{transform_indices = @transform_0, window_bounds = array<i64: 8, 32>}, {pipeline_mode = #tpu.pipeline_mode<synchronous>, transform_indices = @transform_1, window_bounds = array<i64: 32, 512>}, {pipeline_mode = #tpu.pipeline_mode<synchronous>, transform_indices = @transform_2, window_bounds = array<i64: 1, 512>}, {pipeline_mode = #tpu.pipeline_mode<synchronous>, transform_indices = @transform_3, window_bounds = array<i64: 512, 1>}, {transform_indices = @transform_4, window_bounds = array<i64: 1>}, {transform_indices = @transform_5, window_bounds = array<i64: 8, 1>}]} {
    %c0 = arith.constant 0 : index
    %c0_0 = arith.constant 0 : index
    %0 = vector.load %arg1[%c0, %c0_0] : memref<8x32xf32, #tpu.memory_space<vmem>>, vector<8x32xf32>
    %1 = arith.truncf %0 : vector<8x32xf32> to vector<8x32xbf16>
    %c0_1 = arith.constant 0 : index
    %c0_2 = arith.constant 0 : index
    %2 = vector.load %arg2[%c0_1, %c0_2] : memref<32x512xbf16, #tpu.memory_space<vmem>>, vector<32x512xbf16>
    %cst = arith.constant dense<0.000000e+00> : vector<8x512xf32>
    %3 = tpu.matmul %1, %2, %cst {dimension_numbers = #tpu.dot_dimension_numbers<[1], [0], [0], [1], [0, 0, 1, 1], [], []>} : vector<8x32xbf16>, vector<32x512xbf16>, vector<8x512xf32> -> vector<8x512xf32>
    %c0_3 = arith.constant 0 : index
    %c0_4 = arith.constant 0 : index
    %4 = vector.load %arg3[%c0_3, %c0_4] : memref<1x512xf32, #tpu.memory_space<vmem>>, vector<1x512xf32>
    %5 = vector.broadcast %4 : vector<1x512xf32> to vector<8x512xf32>
    %6 = arith.addf %3, %5 : vector<8x512xf32>
    %cst_5 = arith.constant 0.00999999977 : f32
    %7 = vector.broadcast %cst_5 : f32 to vector<8x512xf32>
    %8 = arith.mulf %7, %6 : vector<8x512xf32>
    %9 = arith.maximumf %6, %8 : vector<8x512xf32>
    %c0_6 = arith.constant 0 : index
    %c0_7 = arith.constant 0 : index
    %10 = vector.load %arg4[%c0_6, %c0_7] : memref<512x1xf32, #tpu.memory_space<vmem>>, vector<512x1xf32>
    %cst_8 = arith.constant dense<0.000000e+00> : vector<8x1xf32>
    %11 = tpu.matmul %9, %10, %cst_8 {dimension_numbers = #tpu.dot_dimension_numbers<[1], [0], [0], [1], [0, 0, 1, 1], [], []>} : vector<8x512xf32>, vector<512x1xf32>, vector<8x1xf32> -> vector<8x1xf32>
    %c0_9 = arith.constant 0 : index
    %12 = memref.load %arg5[%c0_9] : memref<1xf32, #tpu.memory_space<smem>>
    %13 = vector.broadcast %12 : f32 to vector<8x1xf32>
    %14 = arith.addf %11, %13 : vector<8x1xf32>
    %c0_10 = arith.constant 0 : index
    %c0_11 = arith.constant 0 : index
    %15 = vector.load %arg6[%c0_10, %c0_11] : memref<8x1xf32, #tpu.memory_space<vmem>>, vector<8x1xf32>
    tpu.vector_store %arg6[%c0_10, %c0_11], %14 {strides = array<i32>} : memref<8x1xf32, #tpu.memory_space<vmem>>, vector<8x1xf32>,
    return
  }
  func.func @transform_0(%arg0: i32) -> (i32, i32) {
    %c0_i32 = arith.constant 0 : i32
    %c0_i32_0 = arith.constant 0 : i32
    return %arg0, %c0_i32 : i32, i32
  }
  func.func @transform_1(%arg0: i32) -> (i32, i32) {
    %c0_i32 = arith.constant 0 : i32
    %c0_i32_0 = arith.constant 0 : i32
    %c0_i32_1 = arith.constant 0 : i32
    return %c0_i32, %c0_i32_0 : i32, i32
  }
  func.func @transform_2(%arg0: i32) -> (i32, i32) {
    %c0_i32 = arith.constant 0 : i32
    %c0_i32_0 = arith.constant 0 : i32
    %c0_i32_1 = arith.constant 0 : i32
    return %c0_i32, %c0_i32_0 : i32, i32
  }
  func.func @transform_3(%arg0: i32) -> (i32, i32) {
    %c0_i32 = arith.constant 0 : i32
    %c0_i32_0 = arith.constant 0 : i32
    %c0_i32_1 = arith.constant 0 : i32
    return %c0_i32, %c0_i32_0 : i32, i32
  }
  func.func @transform_4(%arg0: i32) -> i32 {
    %c0_i32 = arith.constant 0 : i32
    %c0_i32_0 = arith.constant 0 : i32
    return %c0_i32 : i32
  }
  func.func @transform_5(%arg0: i32) -> (i32, i32) {
    %c0_i32 = arith.constant 0 : i32
    %c0_i32_0 = arith.constant 0 : i32
    return %arg0, %c0_i32 : i32, i32
  }
}

module attributes {stable_mosaic.version = 11 : i64} {
  func.func @_mlp_value_kernel(%arg0: i32, %arg1: memref<8x32xf32, #tpu.memory_space<vmem>>, %arg2: memref<32x512xbf16, #tpu.memory_space<vmem>>, %arg3: memref<1x512xf32, #tpu.memory_space<vmem>>, %arg4: memref<512x1xf32, #tpu.memory_space<vmem>>, %arg5: memref<1xf32, #tpu.memory_space<smem>>, %arg6: memref<8x1xf32, #tpu.memory_space<vmem>>) attributes {dimension_semantics = [#tpu.dimension_semantics<parallel>], iteration_bounds = array<i64: 1>, scalar_prefetch = 0 : i64, scratch_operands = 0 : i64, tpu.core_type = #tpu.core_type<tc>, window_params = [{transform_indices = @transform_0, window_bounds = array<i64: 8, 32>}, {pipeline_mode = #tpu.pipeline_mode<synchronous>, transform_indices = @transform_1, window_bounds = array<i64: 32, 512>}, {pipeline_mode = #tpu.pipeline_mode<synchronous>, transform_indices = @transform_2, window_bounds = array<i64: 1, 512>}, {pipeline_mode = #tpu.pipeline_mode<synchronous>, transform_indices = @transform_3, window_bounds = array<i64: 512, 1>}, {transform_indices = @transform_4, window_bounds = array<i64: 1>}, {transform_indices = @transform_5, window_bounds = array<i64: 8, 1>}]} {
    %c0 = arith.constant 0 : index
    %c0_0 = arith.constant 0 : index
    %0 = vector.load %arg1[%c0, %c0_0] : memref<8x32xf32, #tpu.memory_space<vmem>>, vector<8x32xf32>
    %1 = arith.truncf %0 : vector<8x32xf32> to vector<8x32xbf16>
    %c0_1 = arith.constant 0 : index
    %c0_2 = arith.constant 0 : index
    %2 = vector.load %arg2[%c0_1, %c0_2] : memref<32x512xbf16, #tpu.memory_space<vmem>>, vector<32x512xbf16>
    %cst = arith.constant dense<0.000000e+00> : vector<8x512xf32>
    %3 = tpu.matmul %1, %2, %cst {dimension_numbers = #tpu.dot_dimension_numbers<[1], [0], [0], [1], [0, 0, 1, 1], [], []>} : vector<8x32xbf16>, vector<32x512xbf16>, vector<8x512xf32> -> vector<8x512xf32>
    %c0_3 = arith.constant 0 : index
    %c0_4 = arith.constant 0 : index
    %4 = vector.load %arg3[%c0_3, %c0_4] : memref<1x512xf32, #tpu.memory_space<vmem>>, vector<1x512xf32>
    %5 = vector.broadcast %4 : vector<1x512xf32> to vector<8x512xf32>
    %6 = arith.addf %3, %5 : vector<8x512xf32>
    %cst_5 = arith.constant 0.00999999977 : f32
    %7 = vector.broadcast %cst_5 : f32 to vector<8x512xf32>
    %8 = arith.mulf %7, %6 : vector<8x512xf32>
    %9 = arith.maximumf %6, %8 : vector<8x512xf32>
    %c0_6 = arith.constant 0 : index
    %c0_7 = arith.constant 0 : index
    %10 = vector.load %arg4[%c0_6, %c0_7] : memref<512x1xf32, #tpu.memory_space<vmem>>, vector<512x1xf32>
    %cst_8 = arith.constant dense<0.000000e+00> : vector<8x1xf32>
    %11 = tpu.matmul %9, %10, %cst_8 {dimension_numbers = #tpu.dot_dimension_numbers<[1], [0], [0], [1], [0, 0, 1, 1], [], []>} : vector<8x512xf32>, vector<512x1xf32>, vector<8x1xf32> -> vector<8x1xf32>
    %c0_9 = arith.constant 0 : index
    %12 = memref.load %arg5[%c0_9] : memref<1xf32, #tpu.memory_space<smem>>
    %13 = vector.broadcast %12 : f32 to vector<8x1xf32>
    %14 = arith.addf %11, %13 : vector<8x1xf32>
    %c0_10 = arith.constant 0 : index
    %c0_11 = arith.constant 0 : index
    %15 = vector.load %arg6[%c0_10, %c0_11] : memref<8x1xf32, #tpu.memory_space<vmem>>, vector<8x1xf32>
    tpu.vector_store %arg6[%c0_10, %c0_11], %14 {strides = array<i32>} : memref<8x1xf32, #tpu.memory_space<vmem>>, vector<8x1xf32>,
    return
  }
  func.func @transform_0(%arg0: i32) -> (i32, i32) {
    %c0_i32 = arith.constant 0 : i32
    %c0_i32_0 = arith.constant 0 : i32
    return %arg0, %c0_i32 : i32, i32
  }
  func.func @transform_1(%arg0: i32) -> (i32, i32) {
    %c0_i32 = arith.constant 0 : i32
    %c0_i32_0 = arith.constant 0 : i32
    %c0_i32_1 = arith.constant 0 : i32
    return %c0_i32, %c0_i32_0 : i32, i32
  }
  func.func @transform_2(%arg0: i32) -> (i32, i32) {
    %c0_i32 = arith.constant 0 : i32
    %c0_i32_0 = arith.constant 0 : i32
    %c0_i32_1 = arith.constant 0 : i32
    return %c0_i32, %c0_i32_0 : i32, i32
  }
  func.func @transform_3(%arg0: i32) -> (i32, i32) {
    %c0_i32 = arith.constant 0 : i32
    %c0_i32_0 = arith.constant 0 : i32
    %c0_i32_1 = arith.constant 0 : i32
    return %c0_i32, %c0_i32_0 : i32, i32
  }
  func.func @transform_4(%arg0: i32) -> i32 {
    %c0_i32 = arith.constant 0 : i32
    %c0_i32_0 = arith.constant 0 : i32
    return %c0_i32 : i32
  }
  func.func @transform_5(%arg0: i32) -> (i32, i32) {
    %c0_i32 = arith.constant 0 : i32
    %c0_i32_0 = arith.constant 0 : i32
    return %arg0, %c0_i32 : i32, i32
  }
}

</mosaic_0001>

<bundles_post_ra>
// kernel: tpu_custom_call.1
= control target key start
LH: loop header
LB: loop body
LE: loop exit
PB: predicated region body
PF: predicated region fallthrough
CT: control target
= control target key end

     0   :  { %v493_v1 = vmov 0   ;;  %vm94_vm0 = vcmask 261120   ;;  %vm394_vm1 = vcmask 7168   ;;  %s752_s1 = inlined_call_operand.vmem [shape: bf16[32,512], index: 1, kind: input, shape index: {}]   ;;  %s753_s0 = inlined_call_operand.vmem [shape: f32[8,32], index: 0, kind: input, shape index: {}]   ;;  %s754_s3 = inlined_call_operand.vmem [shape: f32[512,1], index: 3, kind: input, shape index: {}]   ;;  %s755_s2 = inlined_call_operand.vmem [shape: f32[1,512], index: 2, kind: input, shape index: {}]   ;;  %s756_s4 = inlined_call_operand.<no memory space> [shape: f32[1], index: 4, kind: input, shape index: {}]   ;;  %s757_s5 = inlined_call_operand.vmem [shape: f32[8,1], index: 5, kind: output, shape index: {}]  }
   0x1   :  { %v481_v0 = vld [vmem:[%s752_s1 + $0x24] ss:$16 sps:$4 sm:$0xff]   ;;  %130 = vmatprep.mubr.bf16.mxu0 %v493_v1  ;;  %171 = vmatprep.mubr.bf16.mxu1 %v493_v1  ;;  %v483_v2 = vld [vmem:[%s752_s1 + $0x2c] ss:$16 sps:$4 sm:$0xff]   ;;  %v485_v3 = vld [vmem:[%s752_s1 + $0x20] ss:$16 sps:$4 sm:$0xff]  }
   0x2   :  { %110 = vmatprep.subr.bf16.mxu0 %v481_v0  ;;  %v486_v4 = vld [vmem:[%s752_s1 + $0x28] ss:$16 sps:$4 sm:$0xff]   ;;  %151 = vmatprep.subr.bf16.mxu1 %v483_v2  ;;  %v487_v5 = vld [vmem:[%s752_s1 + $0x4] ss:$16 sps:$4 sm:$0xff]   ;;  %v489_v6 = vld [vmem:[%s752_s1 + $0xc] ss:$16 sps:$4 sm:$0xff]  }
   0x3   :  { %111 = vmatpush1.bf16.msra.mxu0 %v485_v3  ;;  %152 = vmatpush1.bf16.msra.mxu1 %v486_v4  ;;  %v491_v7 = vld [vmem:[%s752_s1] ss:$16 sps:$4 sm:$0xff]   ;;  %v492_v8 = vld [vmem:[%s752_s1 + $0x8] ss:$16 sps:$4 sm:$0xff]  }
   0x4   :  { %112 = vmatprep.subr.bf16.mxu0 %v487_v5  ;;  %v22_v9 = vld [vmem:[%s753_s0] sm:$0xff]  ;;  %153 = vmatprep.subr.bf16.mxu1 %v489_v6  ;;  %v219_v10 = vld [vmem:[%s754_s3 + $0xf8] sm:$0xff]  ;;  %v218_v15 = vld [vmem:[%s754_s3 + $0xf0] sm:$0xff] }
   0x5   :  { %v251_v11 = vld [vmem:[%s754_s3 + $0x1f8] sm:$0xff]  ;;  %v23_v12 = vpack.c.bf16 %v22_v9, %v22_v9  ;;  %v250_v16 = vld [vmem:[%s754_s3 + $0x1f0] sm:$0xff]  ;;  %v217_v19 = vld [vmem:[%s754_s3 + $0xe8] sm:$0xff] }
   0x6   :  { %v203_v13 = vld [vmem:[%s754_s3 + $0x78] sm:$0xff]  ;;  %v202_v17 = vld [vmem:[%s754_s3 + $0x70] sm:$0xff]  ;;  %v249_v20 = vld [vmem:[%s754_s3 + $0x1e8] sm:$0xff] }
   0x7   :  { %113 = vmatpush1.bf16.msra.mxu0 %v491_v7  ;;  %154 = vmatpush1.bf16.msra.mxu1 %v492_v8  ;;  %v235_v14 = vld [vmem:[%s754_s3 + $0x178] sm:$0xff]  ;;  %v234_v18 = vld [vmem:[%s754_s3 + $0x170] sm:$0xff]  ;;  %v201_v21 = vld [vmem:[%s754_s3 + $0x68] sm:$0xff] }
   0x8   :  { %410 = vmatprep.subr.mxu0 %v219_v10  ;;  %445 = vmatprep.subr.mxu1 %v251_v11  ;;  %v233_v22 = vld [vmem:[%s754_s3 + $0x168] sm:$0xff]  ;;  %v216_v23 = vld [vmem:[%s754_s3 + $0xe0] sm:$0xff]  ;;  %v215_v27 = vld [vmem:[%s754_s3 + $0xd8] sm:$0xff]  ;;  %v34_v11 = vlaneseq }
   0x9   :  { %v248_v24 = vld [vmem:[%s754_s3 + $0x1e0] sm:$0xff]  ;;  %v247_v28 = vld [vmem:[%s754_s3 + $0x1d8] sm:$0xff]  ;;  %v214_v31 = vld [vmem:[%s754_s3 + $0xd0] sm:$0xff] }
   0xa   :  { %408 = vmatmul.mubr.msk.bf16.vlgmr.msra.gmra.mxu0 %vm94_vm0, %v23_v12  ;;  %409 = vmatmul.mubr.msk.bf16.vlgmr.msra.gmra.mxu1 %vm94_vm0, %v23_v12  ;;  %v200_v25 = vld [vmem:[%s754_s3 + $0x60] sm:$0xff]  ;;  %v199_v29 = vld [vmem:[%s754_s3 + $0x58] sm:$0xff]  ;;  %v246_v32 = vld [vmem:[%s754_s3 + $0x1d0] sm:$0xff]  ;;  %v35_v12 = vshrl.u32 %v34_v11, 7 }
   0xb   :  { %411 = vmatpush3.msra.mxu0 %v203_v13  ;;  %446 = vmatpush3.msra.mxu1 %v235_v14  ;;  %v232_v26 = vld [vmem:[%s754_s3 + $0x160] sm:$0xff]  ;;  %v231_v30 = vld [vmem:[%s754_s3 + $0x158] sm:$0xff]  ;;  %v198_v33 = vld [vmem:[%s754_s3 + $0x50] sm:$0xff] }
   0xc   :  { %412 = vmatprep.subr.mxu0 %v218_v15  ;;  %447 = vmatprep.subr.mxu1 %v250_v16  ;;  %v230_v34 = vld [vmem:[%s754_s3 + $0x150] sm:$0xff]  ;;  %v213_v35 = vld [vmem:[%s754_s3 + $0xc8] sm:$0xff]  ;;  %v212_v39 = vld [vmem:[%s754_s3 + $0xc0] sm:$0xff]  ;;  %v36_v13 = vsub.s32 0, %v35_v12  ;;  %v44_v14 = vsub.s32 2, %v35_v12  ;;  %v40_v16 = vsub.s32 1, %v35_v12 }
   0xd   :  { %413 = vmatpush3.msra.mxu0 %v202_v17  ;;  %448 = vmatpush3.msra.mxu1 %v234_v18  ;;  %v245_v36 = vld [vmem:[%s754_s3 + $0x1c8] sm:$0xff]  ;;  %v244_v40 = vld [vmem:[%s754_s3 + $0x1c0] sm:$0xff]  ;;  %v211_v43 = vld [vmem:[%s754_s3 + $0xb8] sm:$0xff]  ;;  %v48_v17 = vsub.s32 3, %v35_v12 }
   0xe   :  { %414 = vmatprep.subr.mxu0 %v217_v19  ;;  %449 = vmatprep.subr.mxu1 %v249_v20  ;;  %v197_v37 = vld [vmem:[%s754_s3 + $0x48] sm:$0xff]  ;;  %v196_v41 = vld [vmem:[%s754_s3 + $0x40] sm:$0xff]  ;;  %v243_v44 = vld [vmem:[%s754_s3 + $0x1b8] sm:$0xff] }
   0xf   :  { %415 = vmatpush3.msra.mxu0 %v201_v21  ;;  %450 = vmatpush3.msra.mxu1 %v233_v22  ;;  %v229_v38 = vld [vmem:[%s754_s3 + $0x148] sm:$0xff]  ;;  %v228_v42 = vld [vmem:[%s754_s3 + $0x140] sm:$0xff]  ;;  %v195_v45 = vld [vmem:[%s754_s3 + $0x38] sm:$0xff] }
  0x10   :  { %416 = vmatprep.subr.mxu0 %v216_v23  ;;  %451 = vmatprep.subr.mxu1 %v248_v24  ;;  %v227_v46 = vld [vmem:[%s754_s3 + $0x138] sm:$0xff]  ;;  %v210_v47 = vld [vmem:[%s754_s3 + $0xb0] sm:$0xff]  ;;  %v209_v51 = vld [vmem:[%s754_s3 + $0xa8] sm:$0xff] }
  0x11   :  { %417 = vmatpush3.msra.mxu0 %v200_v25  ;;  %452 = vmatpush3.msra.mxu1 %v232_v26  ;;  %v242_v48 = vld [vmem:[%s754_s3 + $0x1b0] sm:$0xff]  ;;  %v241_v52 = vld [vmem:[%s754_s3 + $0x1a8] sm:$0xff]  ;;  %v208_v55 = vld [vmem:[%s754_s3 + $0xa0] sm:$0xff] }
  0x12   :  { %418 = vmatprep.subr.mxu0 %v215_v27  ;;  %453 = vmatprep.subr.mxu1 %v247_v28  ;;  %v194_v49 = vld [vmem:[%s754_s3 + $0x30] sm:$0xff]  ;;  %v193_v53 = vld [vmem:[%s754_s3 + $0x28] sm:$0xff]  ;;  %v240_v56 = vld [vmem:[%s754_s3 + $0x1a0] sm:$0xff] }
  0x13   :  { %419 = vmatpush3.msra.mxu0 %v199_v29  ;;  %454 = vmatpush3.msra.mxu1 %v231_v30  ;;  %v226_v50 = vld [vmem:[%s754_s3 + $0x130] sm:$0xff]  ;;  %v225_v54 = vld [vmem:[%s754_s3 + $0x128] sm:$0xff]  ;;  %v192_v57 = vld [vmem:[%s754_s3 + $0x20] sm:$0xff] }
  0x14   :  { %420 = vmatprep.subr.mxu0 %v214_v31  ;;  %455 = vmatprep.subr.mxu1 %v246_v32  ;;  %v224_v58 = vld [vmem:[%s754_s3 + $0x120] sm:$0xff]  ;;  %v207_v59 = vld [vmem:[%s754_s3 + $0x98] sm:$0xff]  ;;  %v206_v63 = vld [vmem:[%s754_s3 + $0x90] sm:$0xff] }
  0x15   :  { %421 = vmatpush3.msra.mxu0 %v198_v33  ;;  %456 = vmatpush3.msra.mxu1 %v230_v34  ;;  %v239_v60 = vld [vmem:[%s754_s3 + $0x198] sm:$0xff]  ;;  %v238_v0 = vld [vmem:[%s754_s3 + $0x190] sm:$0xff]  ;;  %v205_v3 = vld [vmem:[%s754_s3 + $0x88] sm:$0xff] }
  0x16   :  { %422 = vmatprep.subr.mxu0 %v213_v35  ;;  %457 = vmatprep.subr.mxu1 %v245_v36  ;;  %v191_v61 = vld [vmem:[%s754_s3 + $0x18] sm:$0xff]  ;;  %v190_v1 = vld [vmem:[%s754_s3 + $0x10] sm:$0xff]  ;;  %v237_v4 = vld [vmem:[%s754_s3 + $0x188] sm:$0xff] }
  0x17   :  { %423 = vmatpush3.msra.mxu0 %v197_v37  ;;  %458 = vmatpush3.msra.mxu1 %v229_v38  ;;  %v223_v62 = vld [vmem:[%s754_s3 + $0x118] sm:$0xff]  ;;  %v222_v2 = vld [vmem:[%s754_s3 + $0x110] sm:$0xff]  ;;  %v189_v5 = vld [vmem:[%s754_s3 + $0x8] sm:$0xff] }
  0x18   :  { %424 = vmatprep.subr.mxu0 %v212_v39  ;;  %459 = vmatprep.subr.mxu1 %v244_v40  ;;  %v221_v6 = vld [vmem:[%s754_s3 + $0x108] sm:$0xff]  ;;  %v204_v7 = vld [vmem:[%s754_s3 + $0x80] sm:$0xff] }
  0x19   :  { %425 = vmatpush3.msra.mxu0 %v196_v41  ;;  %460 = vmatpush3.msra.mxu1 %v228_v42  ;;  %v236_v8 = vld [vmem:[%s754_s3 + $0x180] sm:$0xff] }
  0x1a   :  { %426 = vmatprep.subr.mxu0 %v211_v43  ;;  %461 = vmatprep.subr.mxu1 %v243_v44  ;;  %v188_v9 = vld [vmem:[%s754_s3] sm:$0xff]  ;;  %v253_v44 = vstv %s756_s4 }
  0x1b   :  { %427 = vmatpush3.msra.mxu0 %v195_v45  ;;  %462 = vmatpush3.msra.mxu1 %v227_v46  ;;  %v220_v10 = vld [vmem:[%s754_s3 + $0x100] sm:$0xff] }
  0x1c   :  { %428 = vmatprep.subr.mxu0 %v210_v47  ;;  %463 = vmatprep.subr.mxu1 %v242_v48  ;;  %v32_v15 = vld [vmem:[%s755_s2] sm:$0xf] }
  0x1d   :  { %429 = vmatpush3.msra.mxu0 %v194_v49  ;;  %464 = vmatpush3.msra.mxu1 %v226_v50  ;;  %v37_v18 = vrot.slane %v32_v15, %v36_v13  ;;  %v45_v19 = vrot.slane %v32_v15, %v44_v14  ;;  %v41_v20 = vrot.slane %v32_v15, %v40_v16 }
  0x1e   :  { %430 = vmatprep.subr.mxu0 %v209_v51  ;;  %465 = vmatprep.subr.mxu1 %v241_v52  ;;  %v49_v21 = vrot.slane %v32_v15, %v48_v17 }
  0x1f   :  { %431 = vmatpush3.msra.mxu0 %v193_v53  ;;  %466 = vmatpush3.msra.mxu1 %v225_v54 }
  0x20   :  { %432 = vmatprep.subr.mxu0 %v208_v55  ;;  %467 = vmatprep.subr.mxu1 %v240_v56 }
  0x21   :  { %433 = vmatpush3.msra.mxu0 %v192_v57  ;;  %468 = vmatpush3.msra.mxu1 %v224_v58 }
  0x22   :  { %434 = vmatprep.subr.mxu0 %v207_v59  ;;  %469 = vmatprep.subr.mxu1 %v239_v60 }
  0x23   :  { %435 = vmatpush3.msra.mxu0 %v191_v61  ;;  %470 = vmatpush3.msra.mxu1 %v223_v62 }
  0x24   :  { %436 = vmatprep.subr.mxu0 %v206_v63  ;;  %471 = vmatprep.subr.mxu1 %v238_v0 }
  0x25   :  { %437 = vmatpush3.msra.mxu0 %v190_v1  ;;  %472 = vmatpush3.msra.mxu1 %v222_v2 }
  0x26   :  { %438 = vmatprep.subr.mxu0 %v205_v3  ;;  %473 = vmatprep.subr.mxu1 %v237_v4 }
  0x27   :  { %439 = vmatpush3.msra.mxu0 %v189_v5  ;;  %474 = vmatpush3.msra.mxu1 %v221_v6 }
  0x28   :  { %440 = vmatprep.subr.mxu0 %v204_v7  ;;  %475 = vmatprep.subr.mxu1 %v236_v8 }
  0x29   :  { %441 = vmatpush3.msra.mxu0 %v188_v9  ;;  %476 = vmatpush3.msra.mxu1 %v220_v10 }
  0xca   :  { %v132_v22 = vpop.f32.mrf.mxu0  ;;  %v173_v23 = vpop.f32.mrf.mxu1 }
  0xcb   :  { %v133_v24 = vadd.f32 %v132_v22, %v37_v18  ;;  %v174_v25 = vadd.f32 %v173_v23, %v45_v19 }
  0xcc   :  { %v134_v26 = vpop.f32.mrf.mxu0  ;;  %v175_v27 = vpop.f32.mrf.mxu1 }
  0xcd   :  { %v135_v28 = vadd.f32 %v134_v26, %v41_v20  ;;  %v176_v29 = vadd.f32 %v175_v27, %v49_v21  ;;  %v180_v30 = vmul.f32 0.01, %v133_v24  ;;  %v182_v31 = vmul.f32 0.01, %v174_v25 }
  0xce   :  { %v136_v32 = vpop.f32.mrf.mxu0  ;;  %v177_v33 = vpop.f32.mrf.mxu1 }
  0xcf   :  { %v181_v34 = vmul.f32 0.01, %v135_v28  ;;  %v183_v35 = vmul.f32 0.01, %v176_v29  ;;  %v184_v40 = vmax.f32 %v133_v24, %v180_v30  ;;  %v186_v41 = vmax.f32 %v174_v25, %v182_v31 }
  0xd0   :  { %v137_v36 = vpop.f32.mrf.mxu0  ;;  %v178_v37 = vpop.f32.mrf.mxu1 }
  0xd1   :  { %v185_v38 = vmax.f32 %v135_v28, %v181_v34  ;;  %v187_v39 = vmax.f32 %v176_v29, %v183_v35 }
  0xd3   :  { %318 = vmatprep.mubr.f32.mxu0 %v185_v38  ;;  %388 = vmatprep.mubr.f32.mxu1 %v187_v39 }
  0xd4   :  { %319 = vmatmul.mubr.f32.vlgmr.msra.gmra.mxu0 %v184_v40  ;;  %389 = vmatmul.mubr.f32.vlgmr.msra.gmra.mxu1 %v186_v41 }
 0x194   :  { %v442_v42 = vpop.f32.mrf.mxu0  ;;  %v477_v43 = vpop.f32.mrf.mxu1 }
 0x196   :  { %v443_v45 = vpop.f32.mrf.mxu0  ;;  %v478_v46 = vpop.f32.mrf.mxu1 }
 0x197   :  { %v444_v47 = vadd.f32 %v443_v45, %v442_v42  ;;  %v479_v49 = vadd.f32 %v478_v46, %v477_v43 }
 0x199   :  { %v321_v48 = vadd.f32 %v444_v47, %v253_v44 }
 0x19b   :  { %v391_v50 = vadd.f32 %v479_v49, %v321_v48 }
 0x19d   :  { %395 = vst.msk [vmem:[%s757_s5] sm:$0xff] %vm394_vm1, %v391_v50 }

// kernel: tpu_custom_call.1
= control target key start
LH: loop header
LB: loop body
LE: loop exit
PB: predicated region body
PF: predicated region fallthrough
CT: control target
= control target key end

     0   :  { %v493_v1 = vmov 0   ;;  %vm94_vm0 = vcmask 261120   ;;  %vm394_vm1 = vcmask 7168   ;;  %s752_s1 = inlined_call_operand.vmem [shape: bf16[32,512], index: 1, kind: input, shape index: {}]   ;;  %s753_s0 = inlined_call_operand.vmem [shape: f32[8,32], index: 0, kind: input, shape index: {}]   ;;  %s754_s3 = inlined_call_operand.vmem [shape: f32[512,1], index: 3, kind: input, shape index: {}]   ;;  %s755_s2 = inlined_call_operand.vmem [shape: f32[1,512], index: 2, kind: input, shape index: {}]   ;;  %s756_s4 = inlined_call_operand.<no memory space> [shape: f32[1], index: 4, kind: input, shape index: {}]   ;;  %s757_s5 = inlined_call_operand.vmem [shape: f32[8,1], index: 5, kind: output, shape index: {}]  }
   0x1   :  { %v481_v0 = vld [vmem:[%s752_s1 + $0x24] ss:$16 sps:$4 sm:$0xff]   ;;  %130 = vmatprep.mubr.bf16.mxu0 %v493_v1  ;;  %171 = vmatprep.mubr.bf16.mxu1 %v493_v1  ;;  %v483_v2 = vld [vmem:[%s752_s1 + $0x2c] ss:$16 sps:$4 sm:$0xff]   ;;  %v485_v3 = vld [vmem:[%s752_s1 + $0x20] ss:$16 sps:$4 sm:$0xff]  }
   0x2   :  { %110 = vmatprep.subr.bf16.mxu0 %v481_v0  ;;  %v486_v4 = vld [vmem:[%s752_s1 + $0x28] ss:$16 sps:$4 sm:$0xff]   ;;  %151 = vmatprep.subr.bf16.mxu1 %v483_v2  ;;  %v487_v5 = vld [vmem:[%s752_s1 + $0x4] ss:$16 sps:$4 sm:$0xff]   ;;  %v489_v6 = vld [vmem:[%s752_s1 + $0xc] ss:$16 sps:$4 sm:$0xff]  }
   0x3   :  { %111 = vmatpush1.bf16.msra.mxu0 %v485_v3  ;;  %152 = vmatpush1.bf16.msra.mxu1 %v486_v4  ;;  %v491_v7 = vld [vmem:[%s752_s1] ss:$16 sps:$4 sm:$0xff]   ;;  %v492_v8 = vld [vmem:[%s752_s1 + $0x8] ss:$16 sps:$4 sm:$0xff]  }
   0x4   :  { %112 = vmatprep.subr.bf16.mxu0 %v487_v5  ;;  %v22_v9 = vld [vmem:[%s753_s0] sm:$0xff]  ;;  %153 = vmatprep.subr.bf16.mxu1 %v489_v6  ;;  %v219_v10 = vld [vmem:[%s754_s3 + $0xf8] sm:$0xff]  ;;  %v218_v15 = vld [vmem:[%s754_s3 + $0xf0] sm:$0xff] }
   0x5   :  { %v251_v11 = vld [vmem:[%s754_s3 + $0x1f8] sm:$0xff]  ;;  %v23_v12 = vpack.c.bf16 %v22_v9, %v22_v9  ;;  %v250_v16 = vld [vmem:[%s754_s3 + $0x1f0] sm:$0xff]  ;;  %v217_v19 = vld [vmem:[%s754_s3 + $0xe8] sm:$0xff] }
   0x6   :  { %v203_v13 = vld [vmem:[%s754_s3 + $0x78] sm:$0xff]  ;;  %v202_v17 = vld [vmem:[%s754_s3 + $0x70] sm:$0xff]  ;;  %v249_v20 = vld [vmem:[%s754_s3 + $0x1e8] sm:$0xff] }
   0x7   :  { %113 = vmatpush1.bf16.msra.mxu0 %v491_v7  ;;  %154 = vmatpush1.bf16.msra.mxu1 %v492_v8  ;;  %v235_v14 = vld [vmem:[%s754_s3 + $0x178] sm:$0xff]  ;;  %v234_v18 = vld [vmem:[%s754_s3 + $0x170] sm:$0xff]  ;;  %v201_v21 = vld [vmem:[%s754_s3 + $0x68] sm:$0xff] }
   0x8   :  { %410 = vmatprep.subr.mxu0 %v219_v10  ;;  %445 = vmatprep.subr.mxu1 %v251_v11  ;;  %v233_v22 = vld [vmem:[%s754_s3 + $0x168] sm:$0xff]  ;;  %v216_v23 = vld [vmem:[%s754_s3 + $0xe0] sm:$0xff]  ;;  %v215_v27 = vld [vmem:[%s754_s3 + $0xd8] sm:$0xff]  ;;  %v34_v11 = vlaneseq }
   0x9   :  { %v248_v24 = vld [vmem:[%s754_s3 + $0x1e0] sm:$0xff]  ;;  %v247_v28 = vld [vmem:[%s754_s3 + $0x1d8] sm:$0xff]  ;;  %v214_v31 = vld [vmem:[%s754_s3 + $0xd0] sm:$0xff] }
   0xa   :  { %408 = vmatmul.mubr.msk.bf16.vlgmr.msra.gmra.mxu0 %vm94_vm0, %v23_v12  ;;  %409 = vmatmul.mubr.msk.bf16.vlgmr.msra.gmra.mxu1 %vm94_vm0, %v23_v12  ;;  %v200_v25 = vld [vmem:[%s754_s3 + $0x60] sm:$0xff]  ;;  %v199_v29 = vld [vmem:[%s754_s3 + $0x58] sm:$0xff]  ;;  %v246_v32 = vld [vmem:[%s754_s3 + $0x1d0] sm:$0xff]  ;;  %v35_v12 = vshrl.u32 %v34_v11, 7 }
   0xb   :  { %411 = vmatpush3.msra.mxu0 %v203_v13  ;;  %446 = vmatpush3.msra.mxu1 %v235_v14  ;;  %v232_v26 = vld [vmem:[%s754_s3 + $0x160] sm:$0xff]  ;;  %v231_v30 = vld [vmem:[%s754_s3 + $0x158] sm:$0xff]  ;;  %v198_v33 = vld [vmem:[%s754_s3 + $0x50] sm:$0xff] }
   0xc   :  { %412 = vmatprep.subr.mxu0 %v218_v15  ;;  %447 = vmatprep.subr.mxu1 %v250_v16  ;;  %v230_v34 = vld [vmem:[%s754_s3 + $0x150] sm:$0xff]  ;;  %v213_v35 = vld [vmem:[%s754_s3 + $0xc8] sm:$0xff]  ;;  %v212_v39 = vld [vmem:[%s754_s3 + $0xc0] sm:$0xff]  ;;  %v36_v13 = vsub.s32 0, %v35_v12  ;;  %v44_v14 = vsub.s32 2, %v35_v12  ;;  %v40_v16 = vsub.s32 1, %v35_v12 }
   0xd   :  { %413 = vmatpush3.msra.mxu0 %v202_v17  ;;  %448 = vmatpush3.msra.mxu1 %v234_v18  ;;  %v245_v36 = vld [vmem:[%s754_s3 + $0x1c8] sm:$0xff]  ;;  %v244_v40 = vld [vmem:[%s754_s3 + $0x1c0] sm:$0xff]  ;;  %v211_v43 = vld [vmem:[%s754_s3 + $0xb8] sm:$0xff]  ;;  %v48_v17 = vsub.s32 3, %v35_v12 }
   0xe   :  { %414 = vmatprep.subr.mxu0 %v217_v19  ;;  %449 = vmatprep.subr.mxu1 %v249_v20  ;;  %v197_v37 = vld [vmem:[%s754_s3 + $0x48] sm:$0xff]  ;;  %v196_v41 = vld [vmem:[%s754_s3 + $0x40] sm:$0xff]  ;;  %v243_v44 = vld [vmem:[%s754_s3 + $0x1b8] sm:$0xff] }
   0xf   :  { %415 = vmatpush3.msra.mxu0 %v201_v21  ;;  %450 = vmatpush3.msra.mxu1 %v233_v22  ;;  %v229_v38 = vld [vmem:[%s754_s3 + $0x148] sm:$0xff]  ;;  %v228_v42 = vld [vmem:[%s754_s3 + $0x140] sm:$0xff]  ;;  %v195_v45 = vld [vmem:[%s754_s3 + $0x38] sm:$0xff] }
  0x10   :  { %416 = vmatprep.subr.mxu0 %v216_v23  ;;  %451 = vmatprep.subr.mxu1 %v248_v24  ;;  %v227_v46 = vld [vmem:[%s754_s3 + $0x138] sm:$0xff]  ;;  %v210_v47 = vld [vmem:[%s754_s3 + $0xb0] sm:$0xff]  ;;  %v209_v51 = vld [vmem:[%s754_s3 + $0xa8] sm:$0xff] }
  0x11   :  { %417 = vmatpush3.msra.mxu0 %v200_v25  ;;  %452 = vmatpush3.msra.mxu1 %v232_v26  ;;  %v242_v48 = vld [vmem:[%s754_s3 + $0x1b0] sm:$0xff]  ;;  %v241_v52 = vld [vmem:[%s754_s3 + $0x1a8] sm:$0xff]  ;;  %v208_v55 = vld [vmem:[%s754_s3 + $0xa0] sm:$0xff] }
  0x12   :  { %418 = vmatprep.subr.mxu0 %v215_v27  ;;  %453 = vmatprep.subr.mxu1 %v247_v28  ;;  %v194_v49 = vld [vmem:[%s754_s3 + $0x30] sm:$0xff]  ;;  %v193_v53 = vld [vmem:[%s754_s3 + $0x28] sm:$0xff]  ;;  %v240_v56 = vld [vmem:[%s754_s3 + $0x1a0] sm:$0xff] }
  0x13   :  { %419 = vmatpush3.msra.mxu0 %v199_v29  ;;  %454 = vmatpush3.msra.mxu1 %v231_v30  ;;  %v226_v50 = vld [vmem:[%s754_s3 + $0x130] sm:$0xff]  ;;  %v225_v54 = vld [vmem:[%s754_s3 + $0x128] sm:$0xff]  ;;  %v192_v57 = vld [vmem:[%s754_s3 + $0x20] sm:$0xff] }
  0x14   :  { %420 = vmatprep.subr.mxu0 %v214_v31  ;;  %455 = vmatprep.subr.mxu1 %v246_v32  ;;  %v224_v58 = vld [vmem:[%s754_s3 + $0x120] sm:$0xff]  ;;  %v207_v59 = vld [vmem:[%s754_s3 + $0x98] sm:$0xff]  ;;  %v206_v63 = vld [vmem:[%s754_s3 + $0x90] sm:$0xff] }
  0x15   :  { %421 = vmatpush3.msra.mxu0 %v198_v33  ;;  %456 = vmatpush3.msra.mxu1 %v230_v34  ;;  %v239_v60 = vld [vmem:[%s754_s3 + $0x198] sm:$0xff]  ;;  %v238_v0 = vld [vmem:[%s754_s3 + $0x190] sm:$0xff]  ;;  %v205_v3 = vld [vmem:[%s754_s3 + $0x88] sm:$0xff] }
  0x16   :  { %422 = vmatprep.subr.mxu0 %v213_v35  ;;  %457 = vmatprep.subr.mxu1 %v245_v36  ;;  %v191_v61 = vld [vmem:[%s754_s3 + $0x18] sm:$0xff]  ;;  %v190_v1 = vld [vmem:[%s754_s3 + $0x10] sm:$0xff]  ;;  %v237_v4 = vld [vmem:[%s754_s3 + $0x188] sm:$0xff] }
  0x17   :  { %423 = vmatpush3.msra.mxu0 %v197_v37  ;;  %458 = vmatpush3.msra.mxu1 %v229_v38  ;;  %v223_v62 = vld [vmem:[%s754_s3 + $0x118] sm:$0xff]  ;;  %v222_v2 = vld [vmem:[%s754_s3 + $0x110] sm:$0xff]  ;;  %v189_v5 = vld [vmem:[%s754_s3 + $0x8] sm:$0xff] }
  0x18   :  { %424 = vmatprep.subr.mxu0 %v212_v39  ;;  %459 = vmatprep.subr.mxu1 %v244_v40  ;;  %v221_v6 = vld [vmem:[%s754_s3 + $0x108] sm:$0xff]  ;;  %v204_v7 = vld [vmem:[%s754_s3 + $0x80] sm:$0xff] }
  0x19   :  { %425 = vmatpush3.msra.mxu0 %v196_v41  ;;  %460 = vmatpush3.msra.mxu1 %v228_v42  ;;  %v236_v8 = vld [vmem:[%s754_s3 + $0x180] sm:$0xff] }
  0x1a   :  { %426 = vmatprep.subr.mxu0 %v211_v43  ;;  %461 = vmatprep.subr.mxu1 %v243_v44  ;;  %v188_v9 = vld [vmem:[%s754_s3] sm:$0xff]  ;;  %v253_v44 = vstv %s756_s4 }
  0x1b   :  { %427 = vmatpush3.msra.mxu0 %v195_v45  ;;  %462 = vmatpush3.msra.mxu1 %v227_v46  ;;  %v220_v10 = vld [vmem:[%s754_s3 + $0x100] sm:$0xff] }
  0x1c   :  { %428 = vmatprep.subr.mxu0 %v210_v47  ;;  %463 = vmatprep.subr.mxu1 %v242_v48  ;;  %v32_v15 = vld [vmem:[%s755_s2] sm:$0xf] }
  0x1d   :  { %429 = vmatpush3.msra.mxu0 %v194_v49  ;;  %464 = vmatpush3.msra.mxu1 %v226_v50  ;;  %v37_v18 = vrot.slane %v32_v15, %v36_v13  ;;  %v45_v19 = vrot.slane %v32_v15, %v44_v14  ;;  %v41_v20 = vrot.slane %v32_v15, %v40_v16 }
  0x1e   :  { %430 = vmatprep.subr.mxu0 %v209_v51  ;;  %465 = vmatprep.subr.mxu1 %v241_v52  ;;  %v49_v21 = vrot.slane %v32_v15, %v48_v17 }
  0x1f   :  { %431 = vmatpush3.msra.mxu0 %v193_v53  ;;  %466 = vmatpush3.msra.mxu1 %v225_v54 }
  0x20   :  { %432 = vmatprep.subr.mxu0 %v208_v55  ;;  %467 = vmatprep.subr.mxu1 %v240_v56 }
  0x21   :  { %433 = vmatpush3.msra.mxu0 %v192_v57  ;;  %468 = vmatpush3.msra.mxu1 %v224_v58 }
  0x22   :  { %434 = vmatprep.subr.mxu0 %v207_v59  ;;  %469 = vmatprep.subr.mxu1 %v239_v60 }
  0x23   :  { %435 = vmatpush3.msra.mxu0 %v191_v61  ;;  %470 = vmatpush3.msra.mxu1 %v223_v62 }
  0x24   :  { %436 = vmatprep.subr.mxu0 %v206_v63  ;;  %471 = vmatprep.subr.mxu1 %v238_v0 }
  0x25   :  { %437 = vmatpush3.msra.mxu0 %v190_v1  ;;  %472 = vmatpush3.msra.mxu1 %v222_v2 }
  0x26   :  { %438 = vmatprep.subr.mxu0 %v205_v3  ;;  %473 = vmatprep.subr.mxu1 %v237_v4 }
  0x27   :  { %439 = vmatpush3.msra.mxu0 %v189_v5  ;;  %474 = vmatpush3.msra.mxu1 %v221_v6 }
  0x28   :  { %440 = vmatprep.subr.mxu0 %v204_v7  ;;  %475 = vmatprep.subr.mxu1 %v236_v8 }
  0x29   :  { %441 = vmatpush3.msra.mxu0 %v188_v9  ;;  %476 = vmatpush3.msra.mxu1 %v220_v10 }
  0xca   :  { %v132_v22 = vpop.f32.mrf.mxu0  ;;  %v173_v23 = vpop.f32.mrf.mxu1 }
  0xcb   :  { %v133_v24 = vadd.f32 %v132_v22, %v37_v18  ;;  %v174_v25 = vadd.f32 %v173_v23, %v45_v19 }
  0xcc   :  { %v134_v26 = vpop.f32.mrf.mxu0  ;;  %v175_v27 = vpop.f32.mrf.mxu1 }
  0xcd   :  { %v135_v28 = vadd.f32 %v134_v26, %v41_v20  ;;  %v176_v29 = vadd.f32 %v175_v27, %v49_v21  ;;  %v180_v30 = vmul.f32 0.01, %v133_v24  ;;  %v182_v31 = vmul.f32 0.01, %v174_v25 }
  0xce   :  { %v136_v32 = vpop.f32.mrf.mxu0  ;;  %v177_v33 = vpop.f32.mrf.mxu1 }
  0xcf   :  { %v181_v34 = vmul.f32 0.01, %v135_v28  ;;  %v183_v35 = vmul.f32 0.01, %v176_v29  ;;  %v184_v40 = vmax.f32 %v133_v24, %v180_v30  ;;  %v186_v41 = vmax.f32 %v174_v25, %v182_v31 }
  0xd0   :  { %v137_v36 = vpop.f32.mrf.mxu0  ;;  %v178_v37 = vpop.f32.mrf.mxu1 }
  0xd1   :  { %v185_v38 = vmax.f32 %v135_v28, %v181_v34  ;;  %v187_v39 = vmax.f32 %v176_v29, %v183_v35 }
  0xd3   :  { %318 = vmatprep.mubr.f32.mxu0 %v185_v38  ;;  %388 = vmatprep.mubr.f32.mxu1 %v187_v39 }
  0xd4   :  { %319 = vmatmul.mubr.f32.vlgmr.msra.gmra.mxu0 %v184_v40  ;;  %389 = vmatmul.mubr.f32.vlgmr.msra.gmra.mxu1 %v186_v41 }
 0x194   :  { %v442_v42 = vpop.f32.mrf.mxu0  ;;  %v477_v43 = vpop.f32.mrf.mxu1 }
 0x196   :  { %v443_v45 = vpop.f32.mrf.mxu0  ;;  %v478_v46 = vpop.f32.mrf.mxu1 }
 0x197   :  { %v444_v47 = vadd.f32 %v443_v45, %v442_v42  ;;  %v479_v49 = vadd.f32 %v478_v46, %v477_v43 }
 0x199   :  { %v321_v48 = vadd.f32 %v444_v47, %v253_v44 }
 0x19b   :  { %v391_v50 = vadd.f32 %v479_v49, %v321_v48 }
 0x19d   :  { %395 = vst.msk [vmem:[%s757_s5] sm:$0xff] %vm394_vm1, %v391_v50 }

</bundles_post_ra>
